<compile_context>
chip_gen: v6e
topology: v6e:2x2x1
jax: 0.10.0
libtpu: 0.0.40
codegen_flags: <defaults>
</compile_context>

<pallas_src>
import functools

import jax
import jax.numpy as jnp
from jax.experimental import pallas as pl
from jax.experimental.pallas import tpu as pltpu


def layernorm_kernel(x_ref, a_ref, b_ref, o_ref, *, eps, features):
    x = x_ref[...].astype(jnp.float32)          # (block_rows, features)
    a = a_ref[...].astype(jnp.float32)          # (1, features)
    b = b_ref[...].astype(jnp.float32)          # (1, features)

    n = jnp.float32(features)
    # Two independent reductions (shorter dependency chain than reducing over
    # the centered values).
    s1 = jnp.sum(x, axis=-1, keepdims=True)                 # (rows, 1)
    s2 = jnp.sum(x * x, axis=-1, keepdims=True)             # (rows, 1)
    mean = s1 / n
    # Unbiased variance (ddof=1), guarded against tiny negative cancellation.
    var = (s2 - s1 * mean) / jnp.float32(features - 1)
    var = jnp.maximum(var, 0.0)
    std = jnp.sqrt(var)
    # Exact per-row reciprocal: only (block_rows, 1) values, invisible on an
    # HBM-bound kernel, strictly better numerics than approx=True.
    inv = pl.reciprocal(std + eps, approx=False)            # (rows, 1)
    out = (x - mean) * inv * a + b
    o_ref[...] = out.astype(o_ref.dtype)


def _vmem_capacity_bytes():
    """Physical VMEM per TensorCore; conservative fallback if query fails."""
    try:
        info = pltpu.get_tpu_info()
        cap = getattr(info, "vmem_capacity_bytes", None)
        if cap:
            return int(cap)
    except Exception:
        pass
    return 64 * 1024 * 1024  # v7x per-TC VMEM (smallest of v5e/v6e/v7x)


def _sublane_multiple(dtype):
    """Row rounding so sub-32-bit dtypes fill packed sublanes (8/16/32)."""
    itemsize = jnp.dtype(dtype).itemsize
    return max(8, 32 // max(itemsize, 1))


def _choose_block_rows(rows, features, dtype, tile_budget_bytes):
    """Largest row tile that fits the per-step VMEM budget.

    Accounts for 2x input + 2x output double buffers at the I/O dtype plus
    ~3 f32 working tiles.  Only shrinks the tile to (a) keep >= 2 grid steps
    so v7x's two TensorCores both get work, and (b) prefer an even step count
    (never shrinking more than 2x for it).
    """
    sub = _sublane_multiple(dtype)
    if rows <= sub:
        return max(rows, 1)

    io_bytes = jnp.dtype(dtype).itemsize
    per_row_bytes = features * (4 * io_bytes + 12)
    br = tile_budget_bytes // max(per_row_bytes, 1)

    # Keep at least 2 grid steps (v7x megacore): cap at ceil(rows/2), rounded
    # up to the sublane multiple.
    half = -(-rows // 2)
    half = -(-half // sub) * sub
    br = min(br, half)
    br = max(sub, (br // sub) * sub)

    # Prefer an even number of grid steps; search downward by one sublane
    # group at a time, but never shrink the tile by more than 2x for balance.
    best = br
    cand = br
    floor = max(sub, br // 2)
    while cand >= floor:
        steps = -(-rows // cand)
        if steps % 2 == 0:
            best = cand
            break
        cand -= sub
    return best


def layer_norm(x, a_2, b_2, eps=1e-6, block_rows=None):
    """Annotated-Transformer LayerNorm (unbiased std, eps after sqrt).

    NOTE: intentionally differs from torch.nn.LayerNorm (ddof=1, eps added
    after the sqrt, NaN for features == 1).
    """
    orig_shape = x.shape
    features = orig_shape[-1]
    rows = 1
    for d in orig_shape[:-1]:
        rows *= d

    x2d = x.reshape(rows, features)
    a2d = a_2.reshape(1, features)
    b2d = b_2.reshape(1, features)

    # Generation-aware VMEM budget: explicit vmem_limit_bytes (so v5e's 16 MiB
    # default scoped limit does not bind), never above ~48 MiB, and never more
    # than half of physical VMEM (64 MiB/TC on v7x, 128 MiB on v5e/v6e).
    vmem_cap = _vmem_capacity_bytes()
    vmem_limit = int(min(vmem_cap // 2, 48 * 1024 * 1024))
    tile_budget = (vmem_limit * 3) // 4

    if block_rows is None:
        block_rows = _choose_block_rows(rows, features, x.dtype, tile_budget)
    block_rows = max(1, min(block_rows, rows))

    grid = (pl.cdiv(rows, block_rows),)  # partial last block masked on writeback

    kernel = functools.partial(layernorm_kernel, eps=eps, features=features)

    io_bytes = jnp.dtype(x.dtype).itemsize
    cost = pl.CostEstimate(
        flops=7 * rows * features,
        transcendentals=2 * rows,
        bytes_accessed=2 * rows * features * io_bytes
        + 2 * features * jnp.dtype(a_2.dtype).itemsize,
    )

    out = pl.pallas_call(
        kernel,
        out_shape=jax.ShapeDtypeStruct((rows, features), x.dtype),
        grid_spec=pl.GridSpec(
            grid=grid,
            in_specs=[
                pl.BlockSpec((block_rows, features), lambda i: (i, 0)),
                pl.BlockSpec((1, features), lambda i: (0, 0)),  # gamma: VMEM-resident
                pl.BlockSpec((1, features), lambda i: (0, 0)),  # beta:  VMEM-resident
            ],
            out_specs=pl.BlockSpec((block_rows, features), lambda i: (i, 0)),
        ),
        compiler_params=pltpu.CompilerParams(
            dimension_semantics=("parallel",),
            vmem_limit_bytes=vmem_limit,
        ),
        cost_estimate=cost,
    )(x2d, a2d, b2d)

    return out.reshape(orig_shape)


if __name__ == "__main__":
    key = jax.random.PRNGKey(0)
    batch, seq, hidden = 2, 8, 32

    x = jax.random.normal(key, (batch, seq, hidden), dtype=jnp.float32)
    # Deterministic params matching nn.Parameter(torch.ones/zeros(features))
    a_2 = jnp.ones((hidden,), dtype=jnp.float32)
    b_2 = jnp.zeros((hidden,), dtype=jnp.float32)

    out = layer_norm(x, a_2, b_2, eps=1e-6)
    jax.block_until_ready(out)

    # Pure-JAX reference (unbiased std, eps after sqrt — matches the module).
    mean = jnp.mean(x, axis=-1, keepdims=True)
    std = jnp.sqrt(jnp.sum((x - mean) ** 2, axis=-1, keepdims=True) / (hidden - 1))
    ref = a_2 * (x - mean) / (std + 1e-6) + b_2

    assert jnp.allclose(out, ref, atol=1e-4, rtol=1e-4), "mismatch vs reference"
    assert jnp.max(jnp.abs(out - ref)) < 1e-4

    print("KERNEL_OK")
</pallas_src>

<mosaic_0001>
module attributes {stable_mosaic.version = 11 : i64} {
  func.func @layernorm_kernel(%arg0: i32, %arg1: memref<8x32xf32, #tpu.memory_space<vmem>>, %arg2: memref<1x32xf32, #tpu.memory_space<vmem>>, %arg3: memref<1x32xf32, #tpu.memory_space<vmem>>, %arg4: memref<8x32xf32, #tpu.memory_space<vmem>>) attributes {dimension_semantics = [#tpu.dimension_semantics<parallel>], iteration_bounds = array<i64: 2>, scalar_prefetch = 0 : i64, scratch_operands = 0 : i64, tpu.core_type = #tpu.core_type<tc>, window_params = [{transform_indices = @transform_0, window_bounds = array<i64: 8, 32>}, {pipeline_mode = #tpu.pipeline_mode<synchronous>, transform_indices = @transform_1, window_bounds = array<i64: 1, 32>}, {pipeline_mode = #tpu.pipeline_mode<synchronous>, transform_indices = @transform_2, window_bounds = array<i64: 1, 32>}, {transform_indices = @transform_3, window_bounds = array<i64: 8, 32>}]} {
    %c0 = arith.constant 0 : index
    %c0_0 = arith.constant 0 : index
    %0 = vector.load %arg1[%c0, %c0_0] : memref<8x32xf32, #tpu.memory_space<vmem>>, vector<8x32xf32>
    %c0_1 = arith.constant 0 : index
    %c0_2 = arith.constant 0 : index
    %1 = vector.load %arg2[%c0_1, %c0_2] : memref<1x32xf32, #tpu.memory_space<vmem>>, vector<1x32xf32>
    %c0_3 = arith.constant 0 : index
    %c0_4 = arith.constant 0 : index
    %2 = vector.load %arg3[%c0_3, %c0_4] : memref<1x32xf32, #tpu.memory_space<vmem>>, vector<1x32xf32>
    %cst = arith.constant dense<0.000000e+00> : vector<8xf32>
    %3 = vector.multi_reduction <add>, %0, %cst [1] : vector<8x32xf32> to vector<8xf32>
    %4 = vector.shape_cast %3 : vector<8xf32> to vector<8x1xf32>
    %5 = arith.mulf %0, %0 : vector<8x32xf32>
    %cst_5 = arith.constant dense<0.000000e+00> : vector<8xf32>
    %6 = vector.multi_reduction <add>, %5, %cst_5 [1] : vector<8x32xf32> to vector<8xf32>
    %7 = vector.shape_cast %6 : vector<8xf32> to vector<8x1xf32>
    %cst_6 = arith.constant 3.200000e+01 : f32
    %8 = vector.broadcast %cst_6 : f32 to vector<8x1xf32>
    %9 = arith.divf %4, %8 : vector<8x1xf32>
    %10 = arith.mulf %4, %9 : vector<8x1xf32>
    %11 = arith.subf %7, %10 : vector<8x1xf32>
    %cst_7 = arith.constant 3.100000e+01 : f32
    %12 = vector.broadcast %cst_7 : f32 to vector<8x1xf32>
    %13 = arith.divf %11, %12 : vector<8x1xf32>
    %cst_8 = arith.constant 0.000000e+00 : f32
    %14 = vector.broadcast %cst_8 : f32 to vector<8x1xf32>
    %15 = arith.maximumf %13, %14 : vector<8x1xf32>
    %16 = math.sqrt %15 : vector<8x1xf32>
    %cst_9 = arith.constant 9.99999997E-7 : f32
    %17 = vector.broadcast %cst_9 : f32 to vector<8x1xf32>
    %18 = arith.addf %16, %17 : vector<8x1xf32>
    %19 = tpu.reciprocal %18 : vector<8x1xf32> -> vector<8x1xf32>
    %20 = vector.broadcast %9 : vector<8x1xf32> to vector<8x32xf32>
    %21 = arith.subf %0, %20 : vector<8x32xf32>
    %22 = vector.broadcast %19 : vector<8x1xf32> to vector<8x32xf32>
    %23 = arith.mulf %21, %22 : vector<8x32xf32>
    %24 = vector.broadcast %1 : vector<1x32xf32> to vector<8x32xf32>
    %25 = arith.mulf %23, %24 : vector<8x32xf32>
    %26 = vector.broadcast %2 : vector<1x32xf32> to vector<8x32xf32>
    %27 = arith.addf %25, %26 : vector<8x32xf32>
    %c0_10 = arith.constant 0 : index
    %c0_11 = arith.constant 0 : index
    %28 = vector.load %arg4[%c0_10, %c0_11] : memref<8x32xf32, #tpu.memory_space<vmem>>, vector<8x32xf32>
    tpu.vector_store %arg4[%c0_10, %c0_11], %27 {strides = array<i32>} : memref<8x32xf32, #tpu.memory_space<vmem>>, vector<8x32xf32>,
    return
  }
  func.func @transform_0(%arg0: i32) -> (i32, i32) {
    %c0_i32 = arith.constant 0 : i32
    %c0_i32_0 = arith.constant 0 : i32
    return %arg0, %c0_i32 : i32, i32
  }
  func.func @transform_1(%arg0: i32) -> (i32, i32) {
    %c0_i32 = arith.constant 0 : i32
    %c0_i32_0 = arith.constant 0 : i32
    %c0_i32_1 = arith.constant 0 : i32
    return %c0_i32, %c0_i32_0 : i32, i32
  }
  func.func @transform_2(%arg0: i32) -> (i32, i32) {
    %c0_i32 = arith.constant 0 : i32
    %c0_i32_0 = arith.constant 0 : i32
    %c0_i32_1 = arith.constant 0 : i32
    return %c0_i32, %c0_i32_0 : i32, i32
  }
  func.func @transform_3(%arg0: i32) -> (i32, i32) {
    %c0_i32 = arith.constant 0 : i32
    %c0_i32_0 = arith.constant 0 : i32
    return %arg0, %c0_i32 : i32, i32
  }
}

</mosaic_0001>

<bundles_post_ra>
// kernel: tpu_custom_call.1
= control target key start
LH: loop header
LB: loop body
LE: loop exit
PB: predicated region body
PF: predicated region fallthrough
CT: control target
= control target key end

     0   :  { %8 = vsyncpa [#allocation3], 0  ;;  %s648_s0 = inlined_call_operand.hbm [shape: f32[16,32], index: 0, kind: input, shape index: {}]   ;;  %s649_s1 = inlined_call_operand.vmem [shape: f32[1,32], index: 1, kind: input, shape index: {}]   ;;  %s650_s2 = inlined_call_operand.vmem [shape: f32[1,32], index: 2, kind: input, shape index: {}]   ;;  %s651_s3 = inlined_call_operand.hbm [shape: f32[16,32], index: 3, kind: output, shape index: {}]  }
   0x1   :  { %10 = vsyncpa [#allocation3 + $0x1], 0 }
   0x2   :  { %11 = vsyncpa [#allocation4], 0 }
   0x3   :  { %13 = vsyncpa [#allocation4 + $0x1], 0  ;;  %s494_s12 = smov 0   ;;  %s496_s13 = smov 0  }
   0x4   :  { %s498_s14 = smov 0   ;;  %s500_s15 = smov 0  }
   0x5 LB: > { %s515_s16 = sadd.s32 4294967295, %s470_s15   ;;  %s314_s17 = sadd.s32 4294967294, %s470_s15   ;;  %s470_s15 = sphi %s500_s15, %s668_s15   ;;  %s466_s14 = sphi %s498_s14, %s667_s14   ;;  %s462_s13 = sphi %s496_s13, %s666_s13   ;;  %s458_s12 = sphi %s494_s12, %s665_s12  }
   0x6   : > { %s519_s18 = sadd.s32 1, %s470_s15   ;;  %s26_s19 = sadd.s32 1, %s466_s14 }
   0x7   : > { %s23_s20 = ssub.s32 %s470_s15, %s519_s18  ;;  %p33_p0 = scmp.ne.s32.totalorder %s466_s14, %s462_s13 }
   0x8   : > { %p24_p1 = scmp.eq.s32.totalorder %s23_s20, 0  ;;  %p34_p2 = scmp.eq.s32.totalorder %s470_s15, 0 }
   0x9   : > { %p39_p3 = scmp.ne.s32.totalorder %s462_s13, %s458_s12  ;;  %p40_p4 = scmp.eq.s32.totalorder %s515_s16, 0 }
   0xa   : > { %s531_s21 = scalar_select %p24_p1, %s466_s14, %s26_s19  }
   0xb   : > { %p533_p5 = por %p34_p2, %p33_p0  ;;  %p537_p6 = por %p40_p4, %p39_p3 }
   0xc   : > { %p105_p7 = scmp.eq.s32.totalorder %s515_s16, 1  ;;  %p111_p8 = scmp.eq.s32.totalorder %s314_s17, 1 }
   0xd   : > { %s655_s23 = scalar_select %p537_p6, 1, 0 }
   0xe   : > { %p340_p10 = scmp.lt.s32.totalorder %s470_s15, 2  ;;  %p544_p11 = por %p105_p7, %p33_p0 }
   0xf   : > { %p548_p12 = por %p111_p8, %p39_p3  ;;  %s137_s26 = sand.u32 1, %s466_s14  }
  0x10   : > { %s656_s24 = scalar_select %p544_p11, 1, 0 }
  0x11   : > { %s657_s25 = scalar_select %p548_p12, 1, 0 }
  0x12   : > { %s318_s27 = sshll.u32 %s470_s15, 7  ;;  %s317_s28 = sshll.u32 %s137_s26, 3 }
  0x13   : > { %s557_s4 = scalar_lea.hbm %s648_s0, %s318_s27  ;;  %s141_s5 = scalar_lea.vmem [#allocation2], %s317_s28 }
  0x14   : > { %s148_s6 = sshll.u32 %s141_s5, 4  ;;  %p561_p13 = pnand %p340_p10, %p533_p5  ;;  %s565_s6 = int_to_ptr.vmem [resolvable:$true] %s148_s6 }
  0x15   : > { %s138_s8 = scalar_lea.sflag [#allocation3], %s137_s26  ;;  %s378_s9 = scalar_lea.hbm %s557_s4, 128 }
  0x16   : > { %p379_p2 = scmp.ne.s32.totalorder %s557_s4, %s378_s9  ;;  %p380_p3 = pneg %p561_p13 }
  0x17   : > { %s383_s17 = scalar_lea.hbm %s648_s0, 256  ;;  %p384_p5 = scmp.lt.s32.totalorder %s557_s4, %s648_s0 }
  0x18   : > { %p381_p4 = pnand %p380_p3, %p379_p2  ;;  %p385_p8 = scmp.lt.s32.totalorder %s383_s17, %s378_s9 }
  0x1a   : > { %p382_p7 = pneg %p381_p4  ;;  %p386_p10 = por %p385_p8, %p384_p5 }
  0x1c   : > { %p387_p9 = pnand %p386_p10, %p382_p7 }
  0x1e   : > { %390 = shalt.err (!%p387_p9)
}
  0x1f   : > { %s391_s22 = scalar_lea.vmem %s565_s6, 128  ;;  %s472_s26 = smov [#allocation2]  }
  0x20   : > { %p392_p0 = scmp.ne.s32.totalorder %s565_s6, %s391_s22  ;;  %s396_s27 = sshll.u32 %s472_s26, 4  ;;  %s397_s27 = int_to_ptr.vmem [resolvable:$false] %s396_s27 }
  0x21   : > { %s398_s28 = scalar_lea.vmem %s397_s27, 256  ;;  %p399_p4 = scmp.lt.s32.totalorder %s565_s6, %s397_s27 }
  0x22   : > { %p394_p1 = pnand %p392_p0, %p380_p3  ;;  %p400_p12 = scmp.lt.s32.totalorder %s398_s28, %s391_s22 }
  0x24   : > { %p395_p2 = pneg %p394_p1  ;;  %p401_p11 = por %p400_p12, %p399_p4 }
  0x26   : > { %p402_p6 = pnand %p401_p11, %p395_p2 }
  0x28   : > { %405 = shalt.err (!%p402_p6)
}
  0x29   : > { %335 = dma.hbm_to_vmem [thread:$0]  (!%p561_p13), %s557_s4, 128, %s565_s6, %s138_s8  }
  0x2a   : > { %p659_p9 = scmp.lt.s32.totalorder %s470_s15, 3  ;;  %p660_p7 = scmp.ge.s32.totalorder %s470_s15, 1 }
  0x2c   : > { %p154_p0 = pnand %p660_p7, %p659_p9 }
  0x2d   : > { %s592_s29 = sand.u32 (!%p154_p0), 1, %s462_s13   ;;  %p661_p6 = scmp.ne.s32.totalorder (!%p154_p0), %s655_s23, 0 }
  0x2e   : > { %157 = sbr.rel (%p154_p0) target bundleno = 255 (0xff), region = 32  ;;  %s320_s30 = sshll.u32 (!%p154_p0), %s592_s29, 3 }
  0x2f   : > { %s160_s5 = scalar_lea.sflag (!%p154_p0), [#allocation3], %s592_s29  ;;  %s163_s7 = scalar_lea.vmem (!%p154_p0), [#allocation2], %s320_s30 }
  0x33   : > { %449 = dma.done.wait (%p661_p6), %s160_s5, 128  }
  0x34   : > { %451 = vsyncadd (%p661_p6), %s160_s5, 4294967168  ;;  %vm189_vm0 = vcmask 261120   ;;  %v186_v0 = vld [vmem:[%s163_s7] sm:$0xff]  ;;  %s325_s9 = sshll.u32 %s515_s16, 7  ;;  %s185_s10 = scalar_lea.vmem [#allocation5], %s320_s30 }
  0x35   : > { %v190_v1 = vsel %vm189_vm0, %v186_v0, 0.0  ;;  %v193_v2 = vmul.f32 %v186_v0, %v186_v0  ;;  %v322_v19 = vld [vmem:[%s649_s1] ss:$0 sm:$0xff]  ;;  %s244_s11 = sshll.u32 %s185_s10, 4  ;;  %s242_s20 = scalar_lea.hbm %s651_s3, %s325_s9  ;;  %s245_s11 = int_to_ptr.vmem [resolvable:$true] %s244_s11 }
  0x36   : > { %191 = vadd.xlane.f32.xlu0 %v190_v1  ;;  %v323_v21 = vld [vmem:[%s650_s2] ss:$0 sm:$0xff]  ;;  %s231_s22 = scalar_lea.sflag [#allocation4], %s592_s29  ;;  %s406_s26 = scalar_lea.vmem %s245_s11, 128 }
  0x37   : > { %v194_v3 = vsel %vm189_vm0, %v193_v2, 0.0  ;;  %p407_p11 = scmp.ne.s32.totalorder %s245_s11, %s406_s26  ;;  %p662_p12 = scmp.ne.s32.totalorder %s656_s24, 0 }
  0x38   : > { %s473_s27 = smov [#allocation5]  }
  0x39   : > { %p408_p13 = pnand %p407_p11, %p662_p12  ;;  %s410_s16 = sshll.u32 %s473_s27, 4  ;;  %s411_s16 = int_to_ptr.vmem [resolvable:$false] %s410_s16 }
  0x3a   : > { %195 = vadd.xlane.f32.xlu0 %v194_v3  ;;  %s412_s28 = scalar_lea.vmem %s411_s16, 256  ;;  %p413_p3 = scmp.lt.s32.totalorder %s245_s11, %s411_s16 }
  0x3b   : > { %p409_p1 = pneg %p408_p13  ;;  %p414_p5 = scmp.lt.s32.totalorder %s412_s28, %s406_s26 }
  0x3d   : > { %p415_p8 = por %p414_p5, %p413_p3 }
  0x3f   : > { %p416_p10 = pnand %p415_p8, %p409_p1 }
  0xbf   : > { %v192_v4 = vpop.xlane.xlu0 %191 }
  0xc0   : > { %v198_v5 = vmul.f32 0.03125, %v192_v4 }
  0xc2   : > { %v199_v6 = vmul.f32 %v198_v5, %v192_v4  ;;  %v213_v17 = vsub.f32 %v186_v0, %v198_v5 }
  0xc3   : > { %v196_v7 = vpop.xlane.xlu0 %195 }
  0xc4   : > { %v200_v8 = vsub.f32 %v196_v7, %v199_v6 }
  0xc6   : > { %v202_v9 = vmul.f32 0.032258064, %v200_v8 }
  0xc8   : > { %v203_v10 = vmax.f32 %v202_v9, 0.0 }
  0xca   : > { %374 = vrsqrt.f32 %v203_v10  ;;  %vm206_vm1 = vcmp.eq.f32.partialorder %v203_v10, inf  ;;  %v209_v13 = vand.u32 2147483648, %v203_v10  ;;  %vm208_vm2 = vcmp.eq.f32.partialorder %v203_v10, 0.0 }
  0xd7   : > { %v375_v11 = vpop.eup %374 }
  0xd8   : > { %v205_v12 = vmul.f32 %v375_v11, %v203_v10 }
  0xda   : > { %v207_v14 = vsel %vm206_vm1, %v203_v10, %v205_v12 }
  0xdb   : > { %v210_v15 = vsel %vm208_vm2, %v209_v13, %v207_v14 }
  0xdc   : > { %v211_v16 = vadd.f32 1e-06, %v210_v15 }
  0xde   : > { %376 = vrcp.f32 %v211_v16 }
  0xeb   : > { %v377_v18 = vpop.eup %376 }
  0xec   : > { %v214_v20 = vmul.f32 %v377_v18, %v213_v17 }
  0xee   : > { %v221_v22 = vmul.f32 %v322_v19, %v214_v20 }
  0xf0   : > { %v228_v23 = vadd.f32 %v323_v21, %v221_v22 }
  0xf2   : > { %229 = vst.msk [vmem:[%s185_s10] sm:$0xff] %vm189_vm0, %v228_v23 }
  0xf3   : > { %419 = shalt.err (!%p416_p10)
}
  0xf4   : > { %s420_s30 = scalar_lea.hbm %s242_s20, 128  ;;  %s424_s7 = scalar_lea.hbm %s651_s3, 256 }
  0xf5   : > { %p421_p2 = scmp.ne.s32.totalorder %s242_s20, %s420_s30  ;;  %p425_p7 = scmp.lt.s32.totalorder %s242_s20, %s651_s3 }
  0xf6   : > { %p426_p0 = scmp.lt.s32.totalorder %s424_s7, %s420_s30 }
  0xf7   : > { %p422_p4 = pnand %p421_p2, %p662_p12 }
  0xf8   : > { %p427_p6 = por %p426_p0, %p425_p7 }
  0xf9   : > { %p423_p9 = pneg %p422_p4 }
  0xfb   : > { %p428_p11 = pnand %p427_p6, %p423_p9 }
  0xfd   : > { %431 = shalt.err (!%p428_p11)
}
  0xfe   : > { %330 = dma.vmem_to_hbm [thread:$0]  (%p662_p12), %s245_s11, 128, %s242_s20, %s231_s22  }
  0xff PF: > { %s256_s6 = sand.u32 1, %s458_s12   ;;  %p663_p13 = scmp.ne.s32.totalorder %s657_s25, 0 }
 0x100   : > { %p664_p1 = scmp.ge.s32.totalorder %s470_s15, 2  ;;  %s257_s8 = scalar_lea.sflag [#allocation4], %s256_s6 }
 0x102   : > { %p337_p3 = pnand %p664_p1, %p663_p13 }
 0x104   : > { %p338_p5 = pneg %p337_p3 }
 0x106   : > { %453 = dma.done.wait (%p338_p5), %s257_s8, 128  }
 0x107   : > { %455 = vsyncadd (%p338_p5), %s257_s8, 4294967168  ;;  %p16_p8 = scmp.ge.s32.totalorder %s519_s18, 4   ;;  %s665_s12 = smov %s462_s13 }
 0x108   : > { %s666_s13 = smov %s466_s14  ;;  %s667_s14 = smov %s531_s21 }
 0x109   : > { %s668_s15 = smov %s519_s18  ;;  %18 = sbr.rel (!%p16_p8) target bundleno = 5 (0x5), region = 77 }
 0x10e   :  { %262 = vsyncpa [#allocation3], 1 }
 0x10f   :  { %264 = vsyncpa [#allocation3 + $0x1], 1 }
 0x110   :  { %265 = vsyncpa [#allocation4], 1 }
 0x111   :  { %267 = vsyncpa [#allocation4 + $0x1], 1 }

</bundles_post_ra>
